<compile_context>
chip_gen: v7x
topology: tpu7x:2x2x1
jax: 0.10.0
libtpu: 0.0.40
codegen_flags: <defaults>
</compile_context>

<pallas_src>
import jax
import jax.numpy as jnp
from jax.experimental import pallas as pl
from jax.experimental.pallas import tpu as pltpu


def mlp_kernel(x_ref,
               w1cat_ref, b1_ref,
               w2_ref, b2_ref,
               w3_ref, b3_ref,
               wo_ref, wp2wo_ref, bo_ref,
               o_ref):
    h1 = w2_ref.shape[0]

    x_bf = x_ref[...].astype(jnp.bfloat16)

    # mm1: fused [fc1 | proj1 @ fc3]: one (T, D) @ (D, h1 + h3) matmul, f32 acc.
    h1cat = jnp.dot(x_bf, w1cat_ref[...], preferred_element_type=jnp.float32)
    # relu(fc1(x)) -> bf16 directly (feeds mm2 + the folded proj2 reduce).
    x1_bf = jnp.maximum(h1cat[:, :h1] + b1_ref[...], 0.0).astype(jnp.bfloat16)
    p1w3 = h1cat[:, h1:]                       # x @ wp1 @ w3   (bias folded into b3')

    # mm2: fc2 only (proj2 folded out of this matmul).
    x2_bf = jnp.maximum(
        jnp.dot(x1_bf, w2_ref[...], preferred_element_type=jnp.float32)
        + b2_ref[...], 0.0).astype(jnp.bfloat16)

    # mm3: fc3, with the folded proj1 path and folded bias added in.
    x3 = jnp.maximum(
        jnp.dot(x2_bf, w3_ref[...], preferred_element_type=jnp.float32)
        + p1w3 + b3_ref[...], 0.0)

    # fc_out + folded proj2: VPU multiplies + lane reduces, no MXU push.
    out = (jnp.sum(x3 * wo_ref[...], axis=-1, keepdims=True)
           + jnp.sum(x1_bf.astype(jnp.float32) * wp2wo_ref[...],
                     axis=-1, keepdims=True)
           + bo_ref[...])
    o_ref[...] = out.astype(o_ref.dtype)


def _round_up(v, m):
    return ((v + m - 1) // m) * m


def _pick_row_tile(n):
    # Big tiles amortize the ~0.35us per-grid-step overhead; keep the grid at
    # >= 2 steps when N allows it so both v7x TensorCores get work.
    if n <= 256:
        return max(8, _round_up(n, 8))
    return max(256, min(1024, _round_up(pl.cdiv(n, 2), 256)))


def link_prediction_forward(x, params, *, row_tile=None):
    """x: (N, D) float32 (or bf16).  Returns (N, 1) float32 (eval-mode forward)."""
    (w1, b1, w2, b2, w3, b3, wo, bo, wp1, bp1, wp2, bp2) = params
    N, D = x.shape
    h1 = w1.shape[1]
    h2 = w2.shape[1]
    h3 = w3.shape[1]

    # ---- Algebraic folds (f32, wrapper side; bf16 cast only for MXU operands) ----
    wp1w3 = wp1 @ w3                                                 # (D, h3)
    w1cat = jnp.concatenate([w1, wp1w3], axis=1).astype(jnp.bfloat16)  # (D, h1+h3)
    b3f = b3 + bp1 @ w3                                              # (1, h3)
    wp2wo = (wp2 @ wo).reshape(1, h1)                                # (1, h1) f32
    bof = bo + bp2 @ wo                                              # (1, 1)  f32
    w2_bf = w2.astype(jnp.bfloat16)                                  # (h1, h2)
    w3_bf = w3.astype(jnp.bfloat16)                                  # (h2, h3)
    wo_row = wo.reshape(1, h3)                                       # (1, h3) f32

    if row_tile is None:
        row_tile = _pick_row_tile(N)
    # No jnp.pad: partial final block is fine (rows independent, masked writeback).
    grid = (pl.cdiv(N, row_tile),)

    # Constant index_map -> weights DMA'd once and kept resident in VMEM.
    full = lambda shape: pl.BlockSpec(shape, lambda i: (0, 0))

    flops = 2 * N * (D * (h1 + h3) + h1 * h2 + h2 * h3 + h1 + h3)
    bytes_accessed = (N * D * x.dtype.itemsize
                      + (w1cat.size + w2_bf.size + w3_bf.size) * 2
                      + (b1.size + b2.size + b3f.size
                         + wo_row.size + wp2wo.size + 1) * 4
                      + N * 4)

    out = pl.pallas_call(
        mlp_kernel,
        out_shape=jax.ShapeDtypeStruct((N, 1), jnp.float32),
        grid_spec=pltpu.PrefetchScalarGridSpec(
            num_scalar_prefetch=0,
            grid=grid,
            in_specs=[
                pl.BlockSpec((row_tile, D), lambda i: (i, 0)),  # x tile
                full((D, h1 + h3)),  full((1, h1)),             # [fc1 | proj1@fc3], b1
                full((h1, h2)),      full((1, h2)),             # fc2
                full((h2, h3)),      full((1, h3)),             # fc3 (b3 + bp1@w3)
                full((1, h3)),                                   # fc_out weight row
                full((1, h1)),                                   # wp2 @ wo
                full((1, 1)),                                    # bo + bp2 @ wo
            ],
            out_specs=pl.BlockSpec((row_tile, 1), lambda i: (i, 0)),
        ),
        compiler_params=pltpu.CompilerParams(
            dimension_semantics=("parallel",),
            vmem_limit_bytes=32 * 1024 * 1024,
        ),
        cost_estimate=pl.CostEstimate(
            flops=int(flops),
            transcendentals=0,
            bytes_accessed=int(bytes_accessed)),
    )(x, w1cat, b1, w2_bf, b2, w3_bf, b3f, wo_row, wp2wo, bof)

    return out


def init_params(key, input_dim, hidden_dims=(256, 128, 64)):
    """PyTorch-style uniform(-1/sqrt(fan_in), 1/sqrt(fan_in)) init, deterministic."""
    h1, h2, h3 = hidden_dims

    def linear(k, fan_in, fan_out):
        kw, kb = jax.random.split(k)
        bound = 1.0 / jnp.sqrt(fan_in)
        w = jax.random.uniform(kw, (fan_in, fan_out), jnp.float32, -bound, bound)
        b = jax.random.uniform(kb, (1, fan_out), jnp.float32, -bound, bound)
        return w, b

    ks = jax.random.split(key, 6)
    w1, b1 = linear(ks[0], input_dim, h1)
    w2, b2 = linear(ks[1], h1, h2)
    w3, b3 = linear(ks[2], h2, h3)
    wo, bo = linear(ks[3], h3, 1)
    wp1, bp1 = linear(ks[4], input_dim, h2)   # proj1 (input_dim != h2)
    wp2, bp2 = linear(ks[5], h1, h3)          # proj2 (h1 != h3)
    return (w1, b1, w2, b2, w3, b3, wo, bo, wp1, bp1, wp2, bp2)


def reference_forward(x, params):
    (w1, b1, w2, b2, w3, b3, wo, bo, wp1, bp1, wp2, bp2) = params
    x1 = jax.nn.relu(x @ w1 + b1)
    x2 = jax.nn.relu(x1 @ w2 + b2)
    x2_res = x2 + (x @ wp1 + bp1)
    x3 = jax.nn.relu(x2_res @ w3 + b3)
    x3_res = x3 + (x1 @ wp2 + bp2)
    return x3_res @ wo + bo


if __name__ == "__main__":
    key = jax.random.PRNGKey(0)
    k_x, k_p, k_x2 = jax.random.split(key, 3)

    D = 32
    params = init_params(k_p, D, hidden_dims=(256, 128, 64))

    # Small batch: single full block (row_tile snaps to 16), grid of 1 step.
    x_small = jax.random.normal(k_x, (16, D), jnp.float32)
    out_small = jax.block_until_ready(link_prediction_forward(x_small, params))
    ref_small = reference_forward(x_small, params)
    assert out_small.shape == (16, 1)
    assert jnp.allclose(out_small, ref_small, atol=5e-2, rtol=5e-2), (
        float(jnp.max(jnp.abs(out_small - ref_small))))

    # Non-divisible larger batch: 2-step grid (512 + ragged 488-row final block,
    # masked writeback), exercises the pad-free path.
    x_big = jax.random.normal(k_x2, (1000, D), jnp.float32)
    out_big = jax.block_until_ready(link_prediction_forward(x_big, params))
    ref_big = reference_forward(x_big, params)
    assert out_big.shape == (1000, 1)
    assert jnp.allclose(out_big, ref_big, atol=5e-2, rtol=5e-2), (
        float(jnp.max(jnp.abs(out_big - ref_big))))

    print("KERNEL_OK")
</pallas_src>

<mosaic_0001>
module attributes {stable_mosaic.version = 11 : i64} {
  func.func @mlp_kernel(%arg0: i32, %arg1: memref<16x32xf32, #tpu.memory_space<vmem>>, %arg2: memref<32x320xbf16, #tpu.memory_space<vmem>>, %arg3: memref<1x256xf32, #tpu.memory_space<vmem>>, %arg4: memref<256x128xbf16, #tpu.memory_space<vmem>>, %arg5: memref<1x128xf32, #tpu.memory_space<vmem>>, %arg6: memref<128x64xbf16, #tpu.memory_space<vmem>>, %arg7: memref<1x64xf32, #tpu.memory_space<vmem>>, %arg8: memref<1x64xf32, #tpu.memory_space<vmem>>, %arg9: memref<1x256xf32, #tpu.memory_space<vmem>>, %arg10: memref<1x1xf32, #tpu.memory_space<vmem>>, %arg11: memref<16x1xf32, #tpu.memory_space<vmem>>) attributes {dimension_semantics = [#tpu.dimension_semantics<parallel>], iteration_bounds = array<i64: 1>, scalar_prefetch = 0 : i64, scratch_operands = 0 : i64, tpu.core_type = #tpu.core_type<tc>, window_params = [{transform_indices = @transform_0, window_bounds = array<i64: 16, 32>}, {pipeline_mode = #tpu.pipeline_mode<synchronous>, transform_indices = @transform_1, window_bounds = array<i64: 32, 320>}, {pipeline_mode = #tpu.pipeline_mode<synchronous>, transform_indices = @transform_2, window_bounds = array<i64: 1, 256>}, {pipeline_mode = #tpu.pipeline_mode<synchronous>, transform_indices = @transform_3, window_bounds = array<i64: 256, 128>}, {pipeline_mode = #tpu.pipeline_mode<synchronous>, transform_indices = @transform_4, window_bounds = array<i64: 1, 128>}, {pipeline_mode = #tpu.pipeline_mode<synchronous>, transform_indices = @transform_5, window_bounds = array<i64: 128, 64>}, {pipeline_mode = #tpu.pipeline_mode<synchronous>, transform_indices = @transform_6, window_bounds = array<i64: 1, 64>}, {pipeline_mode = #tpu.pipeline_mode<synchronous>, transform_indices = @transform_7, window_bounds = array<i64: 1, 64>}, {pipeline_mode = #tpu.pipeline_mode<synchronous>, transform_indices = @transform_8, window_bounds = array<i64: 1, 256>}, {pipeline_mode = #tpu.pipeline_mode<synchronous>, transform_indices = @transform_9, window_bounds = array<i64: 1, 1>}, {transform_indices = @transform_10, window_bounds = array<i64: 16, 1>}]} {
    %c0 = arith.constant 0 : index
    %c0_0 = arith.constant 0 : index
    %0 = vector.load %arg1[%c0, %c0_0] : memref<16x32xf32, #tpu.memory_space<vmem>>, vector<16x32xf32>
    %1 = arith.truncf %0 : vector<16x32xf32> to vector<16x32xbf16>
    %c0_1 = arith.constant 0 : index
    %c0_2 = arith.constant 0 : index
    %2 = vector.load %arg2[%c0_1, %c0_2] : memref<32x320xbf16, #tpu.memory_space<vmem>>, vector<32x320xbf16>
    %cst = arith.constant dense<0.000000e+00> : vector<16x320xf32>
    %3 = tpu.matmul %1, %2, %cst {dimension_numbers = #tpu.dot_dimension_numbers<[1], [0], [0], [1], [0, 0, 1, 1], [], []>} : vector<16x32xbf16>, vector<32x320xbf16>, vector<16x320xf32> -> vector<16x320xf32>
    %4 = vector.extract_strided_slice %3 {offsets = [0, 0], sizes = [16, 256], strides = [1, 1]} : vector<16x320xf32> to vector<16x256xf32>
    %c0_3 = arith.constant 0 : index
    %c0_4 = arith.constant 0 : index
    %5 = vector.load %arg3[%c0_3, %c0_4] : memref<1x256xf32, #tpu.memory_space<vmem>>, vector<1x256xf32>
    %6 = vector.broadcast %5 : vector<1x256xf32> to vector<16x256xf32>
    %7 = arith.addf %4, %6 : vector<16x256xf32>
    %cst_5 = arith.constant 0.000000e+00 : f32
    %8 = vector.broadcast %cst_5 : f32 to vector<16x256xf32>
    %9 = arith.maximumf %7, %8 : vector<16x256xf32>
    %10 = arith.truncf %9 : vector<16x256xf32> to vector<16x256xbf16>
    %11 = vector.extract_strided_slice %3 {offsets = [0, 256], sizes = [16, 64], strides = [1, 1]} : vector<16x320xf32> to vector<16x64xf32>
    %c0_6 = arith.constant 0 : index
    %c0_7 = arith.constant 0 : index
    %12 = vector.load %arg4[%c0_6, %c0_7] : memref<256x128xbf16, #tpu.memory_space<vmem>>, vector<256x128xbf16>
    %cst_8 = arith.constant dense<0.000000e+00> : vector<16x128xf32>
    %13 = tpu.matmul %10, %12, %cst_8 {dimension_numbers = #tpu.dot_dimension_numbers<[1], [0], [0], [1], [0, 0, 1, 1], [], []>} : vector<16x256xbf16>, vector<256x128xbf16>, vector<16x128xf32> -> vector<16x128xf32>
    %c0_9 = arith.constant 0 : index
    %c0_10 = arith.constant 0 : index
    %14 = vector.load %arg5[%c0_9, %c0_10] : memref<1x128xf32, #tpu.memory_space<vmem>>, vector<1x128xf32>
    %15 = vector.broadcast %14 : vector<1x128xf32> to vector<16x128xf32>
    %16 = arith.addf %13, %15 : vector<16x128xf32>
    %cst_11 = arith.constant 0.000000e+00 : f32
    %17 = vector.broadcast %cst_11 : f32 to vector<16x128xf32>
    %18 = arith.maximumf %16, %17 : vector<16x128xf32>
    %19 = arith.truncf %18 : vector<16x128xf32> to vector<16x128xbf16>
    %c0_12 = arith.constant 0 : index
    %c0_13 = arith.constant 0 : index
    %20 = vector.load %arg6[%c0_12, %c0_13] : memref<128x64xbf16, #tpu.memory_space<vmem>>, vector<128x64xbf16>
    %cst_14 = arith.constant dense<0.000000e+00> : vector<16x64xf32>
    %21 = tpu.matmul %19, %20, %cst_14 {dimension_numbers = #tpu.dot_dimension_numbers<[1], [0], [0], [1], [0, 0, 1, 1], [], []>} : vector<16x128xbf16>, vector<128x64xbf16>, vector<16x64xf32> -> vector<16x64xf32>
    %22 = arith.addf %21, %11 : vector<16x64xf32>
    %c0_15 = arith.constant 0 : index
    %c0_16 = arith.constant 0 : index
    %23 = vector.load %arg7[%c0_15, %c0_16] : memref<1x64xf32, #tpu.memory_space<vmem>>, vector<1x64xf32>
    %24 = vector.broadcast %23 : vector<1x64xf32> to vector<16x64xf32>
    %25 = arith.addf %22, %24 : vector<16x64xf32>
    %cst_17 = arith.constant 0.000000e+00 : f32
    %26 = vector.broadcast %cst_17 : f32 to vector<16x64xf32>
    %27 = arith.maximumf %25, %26 : vector<16x64xf32>
    %c0_18 = arith.constant 0 : index
    %c0_19 = arith.constant 0 : index
    %28 = vector.load %arg8[%c0_18, %c0_19] : memref<1x64xf32, #tpu.memory_space<vmem>>, vector<1x64xf32>
    %29 = vector.broadcast %28 : vector<1x64xf32> to vector<16x64xf32>
    %30 = arith.mulf %27, %29 : vector<16x64xf32>
    %cst_20 = arith.constant dense<0.000000e+00> : vector<16xf32>
    %31 = vector.multi_reduction <add>, %30, %cst_20 [1] : vector<16x64xf32> to vector<16xf32>
    %32 = vector.shape_cast %31 : vector<16xf32> to vector<16x1xf32>
    %33 = arith.extf %10 : vector<16x256xbf16> to vector<16x256xf32>
    %c0_21 = arith.constant 0 : index
    %c0_22 = arith.constant 0 : index
    %34 = vector.load %arg9[%c0_21, %c0_22] : memref<1x256xf32, #tpu.memory_space<vmem>>, vector<1x256xf32>
    %35 = vector.broadcast %34 : vector<1x256xf32> to vector<16x256xf32>
    %36 = arith.mulf %33, %35 : vector<16x256xf32>
    %cst_23 = arith.constant dense<0.000000e+00> : vector<16xf32>
    %37 = vector.multi_reduction <add>, %36, %cst_23 [1] : vector<16x256xf32> to vector<16xf32>
    %38 = vector.shape_cast %37 : vector<16xf32> to vector<16x1xf32>
    %39 = arith.addf %32, %38 : vector<16x1xf32>
    %c0_24 = arith.constant 0 : index
    %c0_25 = arith.constant 0 : index
    %40 = vector.load %arg10[%c0_24, %c0_25] : memref<1x1xf32, #tpu.memory_space<vmem>>, vector<1x1xf32>
    %41 = vector.broadcast %40 : vector<1x1xf32> to vector<16x1xf32>
    %42 = arith.addf %39, %41 : vector<16x1xf32>
    %c0_26 = arith.constant 0 : index
    %c0_27 = arith.constant 0 : index
    %43 = vector.load %arg11[%c0_26, %c0_27] : memref<16x1xf32, #tpu.memory_space<vmem>>, vector<16x1xf32>
    tpu.vector_store %arg11[%c0_26, %c0_27], %42 {strides = array<i32>} : memref<16x1xf32, #tpu.memory_space<vmem>>, vector<16x1xf32>,
    return
  }
  func.func @transform_0(%arg0: i32) -> (i32, i32) {
    %c0_i32 = arith.constant 0 : i32
    %c0_i32_0 = arith.constant 0 : i32
    return %arg0, %c0_i32 : i32, i32
  }
  func.func @transform_1(%arg0: i32) -> (i32, i32) {
    %c0_i32 = arith.constant 0 : i32
    %c0_i32_0 = arith.constant 0 : i32
    %c0_i32_1 = arith.constant 0 : i32
    return %c0_i32, %c0_i32_0 : i32, i32
  }
  func.func @transform_2(%arg0: i32) -> (i32, i32) {
    %c0_i32 = arith.constant 0 : i32
    %c0_i32_0 = arith.constant 0 : i32
    %c0_i32_1 = arith.constant 0 : i32
    return %c0_i32, %c0_i32_0 : i32, i32
  }
  func.func @transform_3(%arg0: i32) -> (i32, i32) {
    %c0_i32 = arith.constant 0 : i32
    %c0_i32_0 = arith.constant 0 : i32
    %c0_i32_1 = arith.constant 0 : i32
    return %c0_i32, %c0_i32_0 : i32, i32
  }
  func.func @transform_4(%arg0: i32) -> (i32, i32) {
    %c0_i32 = arith.constant 0 : i32
    %c0_i32_0 = arith.constant 0 : i32
    %c0_i32_1 = arith.constant 0 : i32
    return %c0_i32, %c0_i32_0 : i32, i32
  }
  func.func @transform_5(%arg0: i32) -> (i32, i32) {
    %c0_i32 = arith.constant 0 : i32
    %c0_i32_0 = arith.constant 0 : i32
    %c0_i32_1 = arith.constant 0 : i32
    return %c0_i32, %c0_i32_0 : i32, i32
  }
  func.func @transform_6(%arg0: i32) -> (i32, i32) {
    %c0_i32 = arith.constant 0 : i32
    %c0_i32_0 = arith.constant 0 : i32
    %c0_i32_1 = arith.constant 0 : i32
    return %c0_i32, %c0_i32_0 : i32, i32
  }
  func.func @transform_7(%arg0: i32) -> (i32, i32) {
    %c0_i32 = arith.constant 0 : i32
    %c0_i32_0 = arith.constant 0 : i32
    %c0_i32_1 = arith.constant 0 : i32
    return %c0_i32, %c0_i32_0 : i32, i32
  }
  func.func @transform_8(%arg0: i32) -> (i32, i32) {
    %c0_i32 = arith.constant 0 : i32
    %c0_i32_0 = arith.constant 0 : i32
    %c0_i32_1 = arith.constant 0 : i32
    return %c0_i32, %c0_i32_0 : i32, i32
  }
  func.func @transform_9(%arg0: i32) -> (i32, i32) {
    %c0_i32 = arith.constant 0 : i32
    %c0_i32_0 = arith.constant 0 : i32
    %c0_i32_1 = arith.constant 0 : i32
    return %c0_i32, %c0_i32_0 : i32, i32
  }
  func.func @transform_10(%arg0: i32) -> (i32, i32) {
    %c0_i32 = arith.constant 0 : i32
    %c0_i32_0 = arith.constant 0 : i32
    return %arg0, %c0_i32 : i32, i32
  }
}

</mosaic_0001>

<bundles_post_ra>
// kernel: tpu_custom_call.1
= control target key start
LH: loop header
LB: loop body
LE: loop exit
PB: predicated region body
PF: predicated region fallthrough
CT: control target
= control target key end

     0   :  { %s872_s0 = inlined_call_operand.vmem [shape: f32[16,32], index: 0, kind: input, shape index: {}]   ;;  %s873_s1 = inlined_call_operand.vmem [shape: bf16[32,320], index: 1, kind: input, shape index: {}]   ;;  %s874_s2 = inlined_call_operand.vmem [shape: f32[1,256], index: 2, kind: input, shape index: {}]   ;;  %s875_s3 = inlined_call_operand.hbm [shape: bf16[256,128], index: 3, kind: input, shape index: {}]   ;;  %s876_s4 = inlined_call_operand.vmem [shape: f32[1,128], index: 4, kind: input, shape index: {}]   ;;  %s877_s5 = inlined_call_operand.vmem [shape: bf16[128,64], index: 5, kind: input, shape index: {}]   ;;  %s878_s6 = inlined_call_operand.vmem [shape: f32[1,64], index: 6, kind: input, shape index: {}]   ;;  %s879_s7 = inlined_call_operand.vmem [shape: f32[1,64], index: 7, kind: input, shape index: {}]   ;;  %s880_s8 = inlined_call_operand.vmem [shape: f32[1,256], index: 8, kind: input, shape index: {}]   ;;  %s881_s9 = inlined_call_operand.<no memory space> [shape: f32[1,1], index: 9, kind: input, shape index: {}]   ;;  %s882_s10 = inlined_call_operand.vmem [shape: f32[16,1], index: 10, kind: output, shape index: {}]  }
   0x1   :  { %v15_v0 = vstv %s881_s9 }
   0x2   :  { %16 = vst [vmem:[#allocation2] sm:$0x1] %v15_v0 }
   0x3   :  { %17 = vsyncpa [#allocation4], 0  ;;  %s721_s15 = smov [#allocation3]   ;;  %s697_s19 = scalar_lea.hbm %s875_s3, 2048 }
   0x4   :  { %s29_s16 = sshll.u32 %s721_s15, 4  ;;  %p698_p0 = scmp.ne.s32.totalorder %s875_s3, %s697_s19  ;;  %s30_s16 = int_to_ptr.vmem [resolvable:$true] %s29_s16 }
   0x5   :  { %p701_p1 = scmp.lt.u32.totalorder %s697_s19, %s875_s3 }
   0x7   :  { %p703_p2 = pnand %p701_p1, %p698_p0 }
   0x9   :  { %706 = shalt.err (!%p703_p2)
}
   0xa   :  { %s707_s9 = scalar_lea.vmem %s30_s16, 2048  ;;  %p712_p4 = scmp.lt.s32.totalorder %s30_s16, %s30_s16 }
   0xb   :  { %p708_p3 = scmp.ne.s32.totalorder %s30_s16, %s707_s9  ;;  %p713_p5 = scmp.lt.s32.totalorder %s707_s9, %s707_s9 }
   0xd   :  { %p714_p6 = por %p713_p5, %p712_p4 }
   0xf   :  { %p715_p7 = pnand %p714_p6, %p708_p3 }
  0x11   :  { %718 = shalt.err (!%p715_p7)
}
  0x12   :  { %s722_s24 = smov 64   ;;  %s723_s25 = smov 4  }
  0x13   :  { %35 = dma.hbm_to_vmem [thread:$0]  %s875_s3, 2048, %s30_s16, [#allocation4], %s722_s24, %s722_s24, %s723_s25  }
  0x14   :  { %719 = dma.done.wait [#allocation4], 2048  }
  0x15   :  { %720 = vsyncadd [#allocation4], 4294965248  ;;  %v724_v1 = vmov 0   ;;  %v665_v2 = vld [vmem:[%s873_s1 + $0x4] ss:$12 sps:$4 sm:$0xff]   ;;  %v53_v7 = vld [vmem:[%s872_s0 + $0x8] sm:$0xff]  ;;  %v185_v25 = vlaneseq }
  0x16   :  { %131 = vmatprep.mubr.bf16.mxu0 %v724_v1  ;;  %v667_v3 = vld [vmem:[%s873_s1] ss:$12 sps:$4 sm:$0xff]   ;;  %99 = vmatprep.subr.bf16.mxu0 %v665_v2  ;;  %v668_v4 = vld [vmem:[%s873_s1 + $0x1c] ss:$12 sps:$4 sm:$0xff]   ;;  %v670_v5 = vld [vmem:[%s873_s1 + $0x18] ss:$12 sps:$4 sm:$0xff]  }
  0x17   :  { %v52_v6 = vld [vmem:[%s872_s0] sm:$0xff]  ;;  %100 = vmatpush1.bf16.msra.mxu0 %v667_v3  ;;  %vm95_vm0 = vcmask 261120   ;;  %v673_v11 = vld [vmem:[#allocation3 + $0x48] sm:$0xff]   ;;  %v675_v13 = vld [vmem:[#allocation3 + $0x50] sm:$0xff]   ;;  %v186_v26 = vshrl.u32 %v185_v25, 7  ;;  %v725_v60 = vmov 0.0  }
  0x18   :  { %101 = vmatprep.subr.bf16.mxu0 %v668_v4  ;;  %v671_v8 = vld [vmem:[#allocation3 + $0x40] sm:$0xff]   ;;  %v815_v9 = vpack.c.bf16 %v53_v7, %v52_v6  ;;  %v674_v12 = vld [vmem:[#allocation3 + $0x8] sm:$0xff]   ;;  %v676_v14 = vld [vmem:[#allocation3 + $0x10] sm:$0xff]   ;;  %631 = vmatprep.subr.bf16.mxu1 %v725_v60  ;;  %vm726_vm1 = vmmov 0   ;;  %vm509_vm2 = vcmask 523264   ;;  %vm553_vm3 = vcmask 7168  }
  0x19   :  { %v672_v10 = vld [vmem:[#allocation3] sm:$0xff]   ;;  %v677_v15 = vld [vmem:[#allocation3 + $0x58] sm:$0xff]   ;;  %v681_v19 = vld [vmem:[#allocation3 + $0x68] sm:$0xff]   ;;  %v187_v27 = vsub.s32 0, %v186_v26  ;;  %v191_v29 = vsub.s32 1, %v186_v26  ;;  %635 = vmatprep.mubr.msk.bf16.mxu1 %vm726_vm1, %v725_v60 }
  0x1a   :  { %v678_v16 = vld [vmem:[#allocation3 + $0x18] sm:$0xff]   ;;  %v679_v17 = vld [vmem:[#allocation3 + $0x60] sm:$0xff]   ;;  %v682_v20 = vld [vmem:[#allocation3 + $0x28] sm:$0xff]  }
  0x1b   :  { %102 = vmatpush1.bf16.msra.mxu0 %v670_v5  ;;  %v680_v18 = vld [vmem:[#allocation3 + $0x20] sm:$0xff]   ;;  %v683_v21 = vld [vmem:[#allocation3 + $0x70] sm:$0xff]   ;;  %v685_v23 = vld [vmem:[#allocation3 + $0x78] sm:$0xff]  }
  0x1c   :  { %600 = vmatprep.subr.bf16.mxu0 %v671_v8  ;;  %v684_v22 = vld [vmem:[#allocation3 + $0x30] sm:$0xff]   ;;  %v686_v24 = vld [vmem:[#allocation3 + $0x38] sm:$0xff]   ;;  %v690_v63 = vld [vmem:[%s877_s5 + $0x8] sm:$0xff]  }
  0x1d   :  { %v183_v28 = vld [vmem:[%s874_s2] sm:$0x3]  ;;  %v687_v59 = vld [vmem:[%s873_s1 + $0x8] ss:$12 sps:$4 sm:$0xff]   ;;  %v692_v1 = vld [vmem:[%s877_s5 + $0x18] sm:$0xff]  }
  0x1e   :  { %567 = vmatmul.mubr.msk.bf16.vlgmr.msra.gmra.mrb[0].mxu0 %vm95_vm0, %v815_v9  ;;  %v188_v30 = vrot.slane %v183_v28, %v187_v27  ;;  %v192_v31 = vrot.slane %v183_v28, %v191_v29  ;;  %v520_v40 = vld [vmem:[%s880_s8] sm:$0x3]  ;;  %632 = vmatpush3.bf16.msra.mxu1 %v687_v59  ;;  %v691_v0 = vld [vmem:[%s877_s5 + $0x10] sm:$0xff]   ;;  %v694_v3 = vld [vmem:[%s877_s5 + $0x28] sm:$0xff]  }
  0x1f   :  { %601 = vmatpush3.bf16.msra.mxu0 %v672_v10  ;;  %v525_v46 = vrot.slane %v520_v40, %v187_v27  ;;  %v529_v48 = vrot.slane %v520_v40, %v191_v29  ;;  %v688_v61 = vld [vmem:[%s873_s1 + $0x20] ss:$12 sps:$4 sm:$0xff]   ;;  %633 = vmatprep.subr.bf16.mxu1 %v725_v60  ;;  %v695_v4 = vld [vmem:[%s877_s5 + $0x30] sm:$0xff]   ;;  %v696_v5 = vld [vmem:[%s877_s5 + $0x38] sm:$0xff]  }
  0x20   :  { %602 = vmatprep.subr.bf16.mxu0 %v673_v11  ;;  %v689_v62 = vld [vmem:[%s877_s5] sm:$0xff]  }
  0x21   :  { %v693_v2 = vld [vmem:[%s877_s5 + $0x20] sm:$0xff]  }
  0x22   :  { %634 = vmatpush3.bf16.msra.mxu1 %v688_v61  ;;  %v569_v7 = vld [vmem:[%s876_s4] ss:$0 sm:$0xff] }
  0x23   :  { %603 = vmatpush3.bf16.msra.mxu0 %v674_v12  ;;  %639 = vmatprep.subr.bf16.mxu1 %v725_v60 }
  0x24   :  { %604 = vmatprep.subr.bf16.mxu0 %v675_v13 }
  0x25   :  { %636 = vmatmul.mubr.msk.bf16.vlgmr.msra.gmra.mrb[0].mxu1 %vm95_vm0, %v815_v9 }
  0x26   :  { %640 = vmatpush3.bf16.msra.mxu1 %v689_v62  ;;  %655 = vmatprep.mubr.msk.bf16.mxu1 %vm726_vm1, %v725_v60 }
  0x27   :  { %605 = vmatpush3.bf16.msra.mxu0 %v676_v14  ;;  %641 = vmatprep.subr.bf16.mxu1 %v725_v60 }
  0x28   :  { %606 = vmatprep.subr.bf16.mxu0 %v677_v15 }
  0x2a   :  { %642 = vmatpush3.bf16.msra.mxu1 %v690_v63 }
  0x2b   :  { %607 = vmatpush3.bf16.msra.mxu0 %v678_v16  ;;  %643 = vmatprep.subr.bf16.mxu1 %v725_v60 }
  0x2c   :  { %608 = vmatprep.subr.bf16.mxu0 %v679_v17 }
  0x2e   :  { %644 = vmatpush3.bf16.msra.mxu1 %v691_v0 }
  0x2f   :  { %609 = vmatpush3.bf16.msra.mxu0 %v680_v18  ;;  %645 = vmatprep.subr.bf16.mxu1 %v725_v60 }
  0x30   :  { %610 = vmatprep.subr.bf16.mxu0 %v681_v19 }
  0x32   :  { %646 = vmatpush3.bf16.msra.mxu1 %v692_v1 }
  0x33   :  { %611 = vmatpush3.bf16.msra.mxu0 %v682_v20  ;;  %647 = vmatprep.subr.bf16.mxu1 %v725_v60 }
  0x34   :  { %612 = vmatprep.subr.bf16.mxu0 %v683_v21 }
  0x36   :  { %648 = vmatpush3.bf16.msra.mxu1 %v693_v2 }
  0x37   :  { %613 = vmatpush3.bf16.msra.mxu0 %v684_v22  ;;  %649 = vmatprep.subr.bf16.mxu1 %v725_v60 }
  0x38   :  { %614 = vmatprep.subr.bf16.mxu0 %v685_v23  ;;  %v594_v23 = vld [vmem:[%s878_s6] ss:$0 sm:$0xff] }
  0x3a   :  { %650 = vmatpush3.bf16.msra.mxu1 %v694_v3 }
  0x3b   :  { %615 = vmatpush3.bf16.msra.mxu0 %v686_v24  ;;  %651 = vmatprep.subr.bf16.mxu1 %v725_v60 }
  0x3e   :  { %652 = vmatpush3.bf16.msra.mxu1 %v695_v4 }
  0x3f   :  { %653 = vmatprep.subr.bf16.mxu1 %v725_v60 }
  0x42   :  { %654 = vmatpush3.bf16.msra.mxu1 %v696_v5 }
  0xf1   :  { %v133_v32 = vpop.f32.mrb[0].mxu0 }
  0xf2   :  { %v195_v33 = vadd.f32 %v188_v30, %v133_v32  ;;  %v135_v34 = vpop.f32.mrb[1].mxu0 }
  0xf3   :  { %v196_v35 = vadd.f32 %v192_v31, %v135_v34  ;;  %v137_v36 = vpop.f32.mrb[2].mxu0 }
  0xf4   :  { %v197_v37 = vadd.f32 %v188_v30, %v137_v36  ;;  %v139_v38 = vpop.f32.mrb[3].mxu0  ;;  %v199_v41 = vmax.f32 %v195_v33, 0.0  ;;  %v595_v30 = vld [vmem:[%s879_s7] ss:$0 sm:$0xff] }
  0xf5   :  { %v198_v39 = vadd.f32 %v192_v31, %v139_v38  ;;  %v200_v43 = vmax.f32 %v196_v35, 0.0 }
  0xf6   :  { %v201_v42 = vmax.f32 %v197_v37, 0.0 }
  0xf7   :  { %v202_v44 = vmax.f32 %v198_v39, 0.0  ;;  %v596_v39 = vld [vmem:[#allocation2] ss:$0 sm:$0xff] }
  0xf8   :  { %v203_v45 = vpack.c.bf16 %v201_v42, %v199_v41  ;;  %v176_v18 = vpop.f32.mrb[0].mxu1 }
  0xf9   :  { %v204_v47 = vpack.c.bf16 %v202_v44, %v200_v43  ;;  %v637_v19 = vpop.f32.mrb[1].mxu1 }
  0xfa   :  { %v516_v49 = vunpack.c.l.bf16 %v203_v45  ;;  %v518_v50 = vunpack.c.h.bf16 %v203_v45  ;;  %v179_v20 = vpop.f32.mrb[2].mxu1 }
  0xfb   :  { %372 = vmatprep.mubr.bf16.mxu0 %v204_v47  ;;  %v517_v51 = vunpack.c.l.bf16 %v204_v47  ;;  %v519_v52 = vunpack.c.h.bf16 %v204_v47  ;;  %v638_v21 = vpop.f32.mrb[3].mxu1 }
  0xfc   :  { %373 = vmatmul.mubr.bf16.vlgmr.msra.gmra.mrb[4].mxu0 %v203_v45  ;;  %v532_v53 = vmul.f32 %v525_v46, %v516_v49  ;;  %v534_v54 = vmul.f32 %v525_v46, %v518_v50 }
  0xfd   :  { %v533_v55 = vmul.f32 %v529_v48, %v517_v51  ;;  %v535_v56 = vmul.f32 %v529_v48, %v519_v52 }
  0xff   :  { %v536_v57 = vadd.f32 %v533_v55, %v532_v53  ;;  %v539_v58 = vadd.f32 %v535_v56, %v534_v54 }
 0x101   :  { %537 = vadd.xlane.f32.xlu1 %v536_v57 }
 0x105   :  { %540 = vadd.xlane.f32.xlu1 %v539_v58 }
 0x18e   :  { %v538_v38 = vpop.xlane.xlu1 %537 }
 0x192   :  { %v541_v43 = vpop.xlane.xlu1 %540 }
 0x1cf   :  { %v616_v6 = vpop.f32.mrb[4].mxu0 }
 0x1d0   :  { %v617_v8 = vpop.f32.mrb[5].mxu0 }
 0x1d1   :  { %v618_v9 = vadd.f32 %v617_v8, %v616_v6  ;;  %v619_v10 = vpop.f32.mrb[6].mxu0 }
 0x1d2   :  { %v620_v11 = vpop.f32.mrb[7].mxu0 }
 0x1d3   :  { %v375_v12 = vadd.f32 %v618_v9, %v569_v7  ;;  %v621_v13 = vadd.f32 %v620_v11, %v619_v10 }
 0x1d5   :  { %v378_v14 = vadd.f32 %v621_v13, %v569_v7  ;;  %v381_v15 = vmax.f32 %v375_v12, 0.0 }
 0x1d7   :  { %v382_v16 = vmax.f32 %v378_v14, 0.0 }
 0x1d9   :  { %v383_v17 = vpack.c.bf16 %v382_v16, %v381_v15 }
 0x1db   :  { %656 = vmatmul.mubr.bf16.vlgmr.msra.gmra.mrb[4].mxu1 %v383_v17 }
 0x2ae   :  { %v482_v22 = vpop.f32.mrb[4].mxu1 }
 0x2af   :  { %v483_v24 = vadd.f32 %v482_v22, %v176_v18  ;;  %v657_v25 = vpop.f32.mrb[5].mxu1 }
 0x2b0   :  { %v485_v26 = vpop.f32.mrb[6].mxu1 }
 0x2b1   :  { %v496_v27 = vadd.f32 %v594_v23, %v483_v24  ;;  %v486_v28 = vadd.f32 %v485_v26, %v179_v20  ;;  %v658_v29 = vpop.f32.mrb[7].mxu1 }
 0x2b3   :  { %v498_v31 = vmax.f32 %v496_v27, 0.0  ;;  %v497_v32 = vadd.f32 %v594_v23, %v486_v28 }
 0x2b5   :  { %v499_v33 = vmax.f32 %v497_v32, 0.0  ;;  %v507_v34 = vmul.f32 %v595_v30, %v498_v31 }
 0x2b7   :  { %v510_v35 = vsel %vm509_vm2, %v507_v34, 0.0  ;;  %v508_v36 = vmul.f32 %v595_v30, %v499_v33 }
 0x2b8   :  { %511 = vadd.xlane.f32.xlu0 %v510_v35 }
 0x2b9   :  { %v513_v37 = vsel %vm509_vm2, %v508_v36, 0.0 }
 0x2bc   :  { %514 = vadd.xlane.f32.xlu0 %v513_v37 }
 0x345   :  { %v512_v40 = vpop.xlane.xlu0 %511 }
 0x346   :  { %v542_v41 = vadd.f32 %v538_v38, %v512_v40 }
 0x348   :  { %v551_v42 = vadd.f32 %v596_v39, %v542_v41 }
 0x349   :  { %v515_v44 = vpop.xlane.xlu0 %514 }
 0x34a   :  { %554 = vst.msk [vmem:[%s882_s10] sm:$0xff] %vm553_vm3, %v551_v42  ;;  %v543_v45 = vadd.f32 %v541_v43, %v515_v44 }
 0x34c   :  { %v552_v46 = vadd.f32 %v596_v39, %v543_v45 }
 0x34e   :  { %555 = vst.msk [vmem:[%s882_s10 + $0x8] sm:$0xff] %vm553_vm3, %v552_v46 }
 0x34f   :  { %560 = vsyncpa [#allocation4], 1 }

</bundles_post_ra>
